<compile_context>
chip_gen: v7x
topology: tpu7x:2x2x1
jax: 0.10.0
libtpu: 0.0.40
codegen_flags: <defaults>
</compile_context>

<pallas_src>
import functools
import math

import jax
import jax.numpy as jnp
from jax import lax
from jax.experimental import pallas as pl
from jax.experimental.pallas import tpu as pltpu


def _pick_tile(dim, target):
    """Largest tile <= target that divides `dim`; prefer multiples of 16
    (packed bf16 sublanes), then 8; fall back to the full extent (full-extent
    blocks are always legal)."""
    if dim <= target:
        return dim
    for mult in (16, 8):
        for t in range(min(target, dim), mult - 1, -1):
            if dim % t == 0 and t % mult == 0:
                return t
    return dim


def _simclr_kernel(row_ref, key_ref, pos_ref, out_ref, acc_scr,
                   *, inv_temp, exp_dtype):
    r = pl.program_id(0)
    c = pl.program_id(1)
    nc = pl.num_programs(1)
    tm = row_ref.shape[0]
    tk = key_ref.shape[0]
    m = jnp.float32(inv_temp)  # cos(.) <= 1  =>  sim <= 1/T : constant row max

    @pl.when(c == 0)
    def _init():
        acc_scr[...] = jnp.zeros_like(acc_scr)

    # Single MXU pass: (tm, D) x (tk, D)^T -> (tm, tk) == cos_sim / T.
    s = lax.dot_general(row_ref[...], key_ref[...], (((1,), (1,)), ((), ())),
                        preferred_element_type=jnp.float32)
    e = jnp.exp((s - m).astype(exp_dtype))            # values in (0, ~1]
    acc_scr[...] += jnp.sum(e, axis=-1, keepdims=True, dtype=jnp.float32)

    # Exclude self-similarity.  Only tiles whose row/column ranges intersect
    # the diagonal pay for the iota/compare/select (scalar-gated pl.when).
    @pl.when(jnp.logical_and(r * tm < (c + 1) * tk, c * tk < (r + 1) * tm))
    def _drop_diag():
        row_g = lax.broadcasted_iota(jnp.int32, (tm, tk), 0) + r * tm
        col_g = lax.broadcasted_iota(jnp.int32, (tm, tk), 1) + c * tk
        diag = jnp.where(row_g == col_g, e.astype(jnp.float32), 0.0)
        acc_scr[...] -= jnp.sum(diag, axis=-1, keepdims=True)

    @pl.when(c == nc - 1)
    def _finalize():
        # logsumexp_{j != i} sim[i, j]  -  sim[i, pos(i)]
        out_ref[...] = (m + jnp.log(acc_scr[...])) - pos_ref[...]


def simclr_loss(z_i, z_j, temperature, *, block_m=512, block_k=512,
                matmul_dtype=jnp.bfloat16, exp_dtype=jnp.float32):
    """Pallas implementation of SimCLR_Loss.forward(z_i, z_j).

    exp_dtype=jnp.bfloat16 halves the EUP-bound exp cost on v6e/v7x; keep the
    default float32 on v5e (no bf16 EUP) or when tight accuracy is needed.
    """
    assert z_i.shape == z_j.shape and z_i.ndim == 2
    B, D = z_i.shape
    N = 2 * B
    inv_t = 1.0 / float(temperature)
    scale = math.sqrt(inv_t)

    # --- O(N*D) pre-pass in plain XLA: L2-normalize each row and fold in
    # 1/sqrt(T) so z_hat @ z_hat.T == cos_sim / T directly; cast to the matmul
    # dtype once so the kernel streams half the HBM bytes and never
    # re-normalizes key tiles.
    def _norm(z):
        z = z.astype(jnp.float32)
        ssq = jnp.sum(z * z, axis=-1, keepdims=True)
        return z * (lax.rsqrt(jnp.maximum(ssq, jnp.float32(1e-16))) * scale)

    zi_hat = _norm(z_i)
    zj_hat = _norm(z_j)
    z_hat = jnp.concatenate([zi_hat, zj_hat], axis=0).astype(matmul_dtype)
    # Positive logit sim(z_i[b], z_j[b]) / T is shared by both anchor halves.
    pos_half = jnp.sum(zi_hat * zj_hat, axis=-1, keepdims=True)
    pos = jnp.concatenate([pos_half, pos_half], axis=0)        # (N, 1) f32

    # Tile selection: cap the row tile so the "parallel" row axis has >= 2
    # tiles when possible (v7x megacore); prefer sublane-packed sizes.
    tm_target = min(block_m, N if N < 16 else max(16, N // 2))
    tm = _pick_tile(N, tm_target)
    tk = _pick_tile(N, min(block_k, N))
    nr, nk = N // tm, N // tk

    # Explicit scoped-VMEM budget (v5e's default is only 16 MiB): double-
    # buffered row/key blocks + a few (tm, tk) f32 intermediates + headroom.
    esize = jnp.dtype(matmul_dtype).itemsize
    vmem_est = 2 * (tm + tk) * D * esize + 6 * tm * tk * 4 + 8 * tm * 128 * 4
    vmem_limit = int(min(max(2 * vmem_est, 16 << 20), 64 << 20))

    kernel = functools.partial(_simclr_kernel, inv_temp=inv_t,
                               exp_dtype=exp_dtype)

    grid_spec = pltpu.PrefetchScalarGridSpec(
        num_scalar_prefetch=0,
        grid=(nr, nk),
        in_specs=[
            pl.BlockSpec((tm, D), lambda r, c: (r, 0)),  # anchor rows (resident per r)
            pl.BlockSpec((tk, D), lambda r, c: (c, 0)),  # key rows (streamed)
            pl.BlockSpec((tm, 1), lambda r, c: (r, 0)),  # positive logits
        ],
        out_specs=pl.BlockSpec((tm, 1), lambda r, c: (r, 0)),
        scratch_shapes=[pltpu.VMEM((tm, 1), jnp.float32)],  # online sum-exp acc
    )

    per_row = pl.pallas_call(
        kernel,
        out_shape=jax.ShapeDtypeStruct((N, 1), jnp.float32),
        grid_spec=grid_spec,
        compiler_params=pltpu.CompilerParams(
            dimension_semantics=("parallel", "arbitrary"),
            vmem_limit_bytes=vmem_limit),
    )(z_hat, z_hat, pos)

    return jnp.sum(per_row) / jnp.float32(N)


def _reference_loss(z_i, z_j, temperature):
    # Pure-JAX reference mirroring the PyTorch module semantics.
    B = z_i.shape[0]
    N = 2 * B
    z = jnp.concatenate([z_i, z_j], axis=0).astype(jnp.float32)
    nrm = jnp.linalg.norm(z, axis=-1, keepdims=True)
    sim = (z @ z.T) / jnp.maximum(nrm * nrm.T, 1e-8) / temperature
    idx = jnp.arange(N)
    pos = sim[idx, (idx + B) % N]
    mask = ~jnp.eye(N, dtype=bool)
    lse = jax.scipy.special.logsumexp(jnp.where(mask, sim, -jnp.inf), axis=-1)
    return jnp.sum(lse - pos) / N


if __name__ == "__main__":
    temperature = 0.5
    key = jax.random.PRNGKey(0)
    k1, k2, k3, k4 = jax.random.split(key, 4)

    # Config A: single-tile path, bf16 streaming (batch=4, feat=32).
    zi_a = jax.random.normal(k1, (4, 32), dtype=jnp.float32)
    zj_a = jax.random.normal(k2, (4, 32), dtype=jnp.float32)
    loss_a = simclr_loss(zi_a, zj_a, temperature)
    jax.block_until_ready(loss_a)
    ref_a = _reference_loss(zi_a, zj_a, temperature)
    assert jnp.allclose(loss_a, ref_a, rtol=2e-2, atol=2e-2), (loss_a, ref_a)

    # Config B: 2x2 grid, f32 operands, tight tolerance (batch=16, feat=64,
    # 16x16 tiles) -- exercises tiling, online accumulation, and the
    # pl.when-gated diagonal exclusion (fires only when r == c).
    zi_b = jax.random.normal(k3, (16, 64), dtype=jnp.float32)
    zj_b = jax.random.normal(k4, (16, 64), dtype=jnp.float32)
    loss_b = simclr_loss(zi_b, zj_b, temperature,
                         block_m=16, block_k=16, matmul_dtype=jnp.float32)
    jax.block_until_ready(loss_b)
    ref_b = _reference_loss(zi_b, zj_b, temperature)
    assert jnp.allclose(loss_b, ref_b, rtol=1e-4, atol=1e-4), (loss_b, ref_b)

    print("KERNEL_OK")
</pallas_src>

<mosaic_0001>
module attributes {stable_mosaic.version = 11 : i64} {
  func.func @_simclr_kernel(%arg0: i32, %arg1: i32, %arg2: memref<8x32xbf16, #tpu.memory_space<vmem>>, %arg3: memref<8x32xbf16, #tpu.memory_space<vmem>>, %arg4: memref<8x1xf32, #tpu.memory_space<vmem>>, %arg5: memref<8x1xf32, #tpu.memory_space<vmem>>, %arg6: memref<8x1xf32, #tpu.memory_space<vmem>>) attributes {dimension_semantics = [#tpu.dimension_semantics<parallel>, #tpu.dimension_semantics<arbitrary>], iteration_bounds = array<i64: 1, 1>, scalar_prefetch = 0 : i64, scratch_operands = 1 : i64, tpu.core_type = #tpu.core_type<tc>, window_params = [{transform_indices = @transform_0, window_bounds = array<i64: 8, 32>}, {transform_indices = @transform_1, window_bounds = array<i64: 8, 32>}, {transform_indices = @transform_2, window_bounds = array<i64: 8, 1>}, {transform_indices = @transform_3, window_bounds = array<i64: 8, 1>}]} {
    %c0_i32 = arith.constant 0 : i32
    %0 = arith.cmpi eq, %arg1, %c0_i32 : i32
    %1 = arith.extui %0 : i1 to i32
    %c0_i32_0 = arith.constant 0 : i32
    %2 = arith.cmpi ne, %1, %c0_i32_0 : i32
    scf.if %2 {
      %cst_18 = arith.constant 0.000000e+00 : f32
      %28 = vector.broadcast %cst_18 : f32 to vector<8x1xf32>
      %c0_19 = arith.constant 0 : index
      %c0_20 = arith.constant 0 : index
      %29 = vector.load %arg6[%c0_19, %c0_20] : memref<8x1xf32, #tpu.memory_space<vmem>>, vector<8x1xf32>
      tpu.vector_store %arg6[%c0_19, %c0_20], %28 {strides = array<i32>} : memref<8x1xf32, #tpu.memory_space<vmem>>, vector<8x1xf32>,
    } else {
    }
    %c0 = arith.constant 0 : index
    %c0_1 = arith.constant 0 : index
    %3 = vector.load %arg2[%c0, %c0_1] : memref<8x32xbf16, #tpu.memory_space<vmem>>, vector<8x32xbf16>
    %c0_2 = arith.constant 0 : index
    %c0_3 = arith.constant 0 : index
    %4 = vector.load %arg3[%c0_2, %c0_3] : memref<8x32xbf16, #tpu.memory_space<vmem>>, vector<8x32xbf16>
    %cst = arith.constant dense<0.000000e+00> : vector<8x8xf32>
    %5 = tpu.matmul %3, %4, %cst {dimension_numbers = #tpu.dot_dimension_numbers<[1], [1], [0], [0], [0, 0, 1, 0], [], []>} : vector<8x32xbf16>, vector<8x32xbf16>, vector<8x8xf32> -> vector<8x8xf32>
    %cst_4 = arith.constant 2.000000e+00 : f32
    %6 = vector.broadcast %cst_4 : f32 to vector<8x8xf32>
    %7 = arith.subf %5, %6 : vector<8x8xf32>
    %8 = math.exp %7 : vector<8x8xf32>
    %c0_5 = arith.constant 0 : index
    %c0_6 = arith.constant 0 : index
    %9 = vector.load %arg6[%c0_5, %c0_6] : memref<8x1xf32, #tpu.memory_space<vmem>>, vector<8x1xf32>
    %cst_7 = arith.constant dense<0.000000e+00> : vector<8xf32>
    %10 = vector.multi_reduction <add>, %8, %cst_7 [1] : vector<8x8xf32> to vector<8xf32>
    %11 = vector.shape_cast %10 : vector<8xf32> to vector<8x1xf32>
    %12 = arith.addf %9, %11 : vector<8x1xf32>
    %c0_8 = arith.constant 0 : index
    %c0_9 = arith.constant 0 : index
    %13 = vector.load %arg6[%c0_8, %c0_9] : memref<8x1xf32, #tpu.memory_space<vmem>>, vector<8x1xf32>
    tpu.vector_store %arg6[%c0_8, %c0_9], %12 {strides = array<i32>} : memref<8x1xf32, #tpu.memory_space<vmem>>, vector<8x1xf32>,
    %c8_i32 = arith.constant 8 : i32
    %14 = arith.muli %arg0, %c8_i32 : i32
    %c1_i32 = arith.constant 1 : i32
    %15 = arith.addi %arg1, %c1_i32 : i32
    %c8_i32_10 = arith.constant 8 : i32
    %16 = arith.muli %15, %c8_i32_10 : i32
    %17 = arith.cmpi slt, %14, %16 : i32
    %c8_i32_11 = arith.constant 8 : i32
    %18 = arith.muli %arg1, %c8_i32_11 : i32
    %c1_i32_12 = arith.constant 1 : i32
    %19 = arith.addi %arg0, %c1_i32_12 : i32
    %c8_i32_13 = arith.constant 8 : i32
    %20 = arith.muli %19, %c8_i32_13 : i32
    %21 = arith.cmpi slt, %18, %20 : i32
    %22 = arith.andi %17, %21 : i1
    %23 = arith.extui %22 : i1 to i32
    %c0_i32_14 = arith.constant 0 : i32
    %24 = arith.cmpi ne, %23, %c0_i32_14 : i32
    scf.if %24 {
      %28 = tpu.iota {dimensions = array<i32: 0>} : vector<8x8xi32>
      %c8_i32_18 = arith.constant 8 : i32
      %29 = arith.muli %arg0, %c8_i32_18 : i32
      %30 = vector.broadcast %29 : i32 to vector<8x8xi32>
      %31 = arith.addi %28, %30 : vector<8x8xi32>
      %32 = tpu.iota {dimensions = array<i32: 1>} : vector<8x8xi32>
      %c8_i32_19 = arith.constant 8 : i32
      %33 = arith.muli %arg1, %c8_i32_19 : i32
      %34 = vector.broadcast %33 : i32 to vector<8x8xi32>
      %35 = arith.addi %32, %34 : vector<8x8xi32>
      %36 = arith.cmpi eq, %31, %35 : vector<8x8xi32>
      %cst_20 = arith.constant 0.000000e+00 : f32
      %37 = vector.broadcast %cst_20 : f32 to vector<8x8xf32>
      %38 = arith.select %36, %8, %37 : vector<8x8xi1>, vector<8x8xf32>
      %c0_21 = arith.constant 0 : index
      %c0_22 = arith.constant 0 : index
      %39 = vector.load %arg6[%c0_21, %c0_22] : memref<8x1xf32, #tpu.memory_space<vmem>>, vector<8x1xf32>
      %cst_23 = arith.constant dense<0.000000e+00> : vector<8xf32>
      %40 = vector.multi_reduction <add>, %38, %cst_23 [1] : vector<8x8xf32> to vector<8xf32>
      %41 = vector.shape_cast %40 : vector<8xf32> to vector<8x1xf32>
      %42 = arith.subf %39, %41 : vector<8x1xf32>
      %c0_24 = arith.constant 0 : index
      %c0_25 = arith.constant 0 : index
      %43 = vector.load %arg6[%c0_24, %c0_25] : memref<8x1xf32, #tpu.memory_space<vmem>>, vector<8x1xf32>
      tpu.vector_store %arg6[%c0_24, %c0_25], %42 {strides = array<i32>} : memref<8x1xf32, #tpu.memory_space<vmem>>, vector<8x1xf32>,
    } else {
    }
    %c0_i32_15 = arith.constant 0 : i32
    %25 = arith.cmpi eq, %arg1, %c0_i32_15 : i32
    %26 = arith.extui %25 : i1 to i32
    %cst_16 = arith.constant 2.000000e+00 : f32
    %c0_i32_17 = arith.constant 0 : i32
    %27 = arith.cmpi ne, %26, %c0_i32_17 : i32
    scf.if %27 {
      %c0_18 = arith.constant 0 : index
      %c0_19 = arith.constant 0 : index
      %28 = vector.load %arg6[%c0_18, %c0_19] : memref<8x1xf32, #tpu.memory_space<vmem>>, vector<8x1xf32>
      %29 = math.log %28 : vector<8x1xf32>
      %30 = vector.broadcast %cst_16 : f32 to vector<8x1xf32>
      %31 = arith.addf %30, %29 : vector<8x1xf32>
      %c0_20 = arith.constant 0 : index
      %c0_21 = arith.constant 0 : index
      %32 = vector.load %arg4[%c0_20, %c0_21] : memref<8x1xf32, #tpu.memory_space<vmem>>, vector<8x1xf32>
      %33 = arith.subf %31, %32 : vector<8x1xf32>
      %c0_22 = arith.constant 0 : index
      %c0_23 = arith.constant 0 : index
      %34 = vector.load %arg5[%c0_22, %c0_23] : memref<8x1xf32, #tpu.memory_space<vmem>>, vector<8x1xf32>
      tpu.vector_store %arg5[%c0_22, %c0_23], %33 {strides = array<i32>} : memref<8x1xf32, #tpu.memory_space<vmem>>, vector<8x1xf32>,
    } else {
    }
    return
  }
  func.func @transform_0(%arg0: i32, %arg1: i32) -> (i32, i32) {
    %c0_i32 = arith.constant 0 : i32
    %c0_i32_0 = arith.constant 0 : i32
    return %arg0, %c0_i32 : i32, i32
  }
  func.func @transform_1(%arg0: i32, %arg1: i32) -> (i32, i32) {
    %c0_i32 = arith.constant 0 : i32
    %c0_i32_0 = arith.constant 0 : i32
    return %arg1, %c0_i32 : i32, i32
  }
  func.func @transform_2(%arg0: i32, %arg1: i32) -> (i32, i32) {
    %c0_i32 = arith.constant 0 : i32
    %c0_i32_0 = arith.constant 0 : i32
    return %arg0, %c0_i32 : i32, i32
  }
  func.func @transform_3(%arg0: i32, %arg1: i32) -> (i32, i32) {
    %c0_i32 = arith.constant 0 : i32
    %c0_i32_0 = arith.constant 0 : i32
    return %arg0, %c0_i32 : i32, i32
  }
}

</mosaic_0001>

<bundles_post_ra>
// kernel: tpu_custom_call.1
= control target key start
LH: loop header
LB: loop body
LE: loop exit
PB: predicated region body
PF: predicated region fallthrough
CT: control target
= control target key end

     0   :  { %vm19_vm0 = vcmask 7168   ;;  %vm23_vm1 = vcmask 261120   ;;  %v139_v0 = vmov 0.0   ;;  %vm140_vm2 = vmmov 0   ;;  %s177_s1 = inlined_call_operand.vmem [shape: bf16[8,32], index: 1, kind: input, shape index: {}]   ;;  %s178_s0 = inlined_call_operand.vmem [shape: bf16[8,32], index: 0, kind: input, shape index: {}]   ;;  %s179_s2 = inlined_call_operand.vmem [shape: f32[8,1], index: 2, kind: input, shape index: {}]   ;;  %s180_s3 = inlined_call_operand.vmem [shape: f32[8,1], index: 3, kind: output, shape index: {}]  }
   0x1   :  { %20 = vst.msk [vmem:[#allocation2] sm:$0xff] %vm19_vm0, %v139_v0  ;;  %127 = vmatprep.subr.bf16.mxu0 %v139_v0  ;;  %v22_v1 = vld [vmem:[%s177_s1] sm:$0xf]  ;;  %129 = vmatprep.mubr.msk.bf16.mxu0 %vm140_vm2, %v139_v0  ;;  %v93_v10 = vlaneseq  ;;  %vm74_vm3 = vcmask 64512  }
   0x2   :  { %v28_v2 = vsel %vm23_vm1, %v22_v1, 0  ;;  %v21_v3 = vld [vmem:[%s178_s0] sm:$0xf] }
   0x3   :  { %128 = vmatpush3.bf16.xpose.msra.mxu0 %v28_v2  ;;  %v94_v11 = vshrl.u32 %v93_v10, 7  ;;  %v98_v12 = vand.u32 127, %v93_v10  ;;  %v116_v26 = vld [vmem:[%s179_s2] sm:$0xff] }
   0x5   :  { %vm101_vm4 = vcmp.eq.s32.totalorder %v94_v11, %v98_v12 }
   0x8   :  { %v73_v17 = vld [vmem:[#allocation2] sm:$0xff] }
   0xa   :  { %130 = vmatmul.mubr.msk.bf16.vlgmr.msra.gmra.mrb[0].mxu0 %vm23_vm1, %v21_v3 }
  0xdd   :  { %v64_v4 = vpop.f32.mrb[0].mxu0 }
  0xde   :  { %v124_v5 = vadd.f32 -2.0, %v64_v4  ;;  %v131_v6 = vpop.f32.mrb[1].mxu0 }
  0xdf   :  { %v67_v7 = vpop.f32.mrb[2].mxu0 }
  0xe0   :  { %v71_v8 = vmul.f32 1.442695, %v124_v5  ;;  %v132_v9 = vpop.f32.mrb[3].mxu0 }
  0xe2   :  { %135 = vpow2.f32 %v71_v8 }
  0xec   :  { %v136_v13 = vpop.eup %135 }
  0xed   :  { %v75_v14 = vsel %vm74_vm3, %v136_v13, 0.0  ;;  %v102_v15 = vsel %vm101_vm4, %v136_v13, 0.0 }
  0xee   :  { %76 = vadd.xlane.f32.xlu0 %v75_v14  ;;  %v104_v16 = vsel %vm74_vm3, %v102_v15, 0.0 }
  0xf2   :  { %105 = vadd.xlane.f32.xlu0 %v104_v16 }
 0x17b   :  { %v77_v18 = vpop.xlane.xlu0 %76 }
 0x17c   :  { %v78_v19 = vadd.f32 %v77_v18, %v73_v17 }
 0x17e   :  { %80 = vst.msk [vmem:[#allocation2] sm:$0xff] %vm19_vm0, %v78_v19 }
 0x17f   :  { %v106_v21 = vpop.xlane.xlu0 %105 }
 0x185   :  { %v103_v20 = vld [vmem:[#allocation2] sm:$0xff] }
 0x186   :  { %v107_v22 = vsub.f32 %v103_v20, %v106_v21 }
 0x188   :  { %108 = vst.msk [vmem:[#allocation2] sm:$0xff] %vm19_vm0, %v107_v22 }
 0x18f   :  { %v112_v23 = vld [vmem:[#allocation2] sm:$0xff] }
 0x190   :  { %137 = vlog2.f32 %v112_v23 }
 0x19a   :  { %v138_v24 = vpop.eup %137 }
 0x19b   :  { %v114_v25 = vmul.f32 0.6931472, %v138_v24 }
 0x19d   :  { %v115_v27 = vadd.f32 2.0, %v114_v25 }
 0x19f   :  { %v117_v28 = vsub.f32 %v115_v27, %v116_v26 }
 0x1a1   :  { %118 = vst.msk [vmem:[%s180_s3] sm:$0xff] %vm19_vm0, %v117_v28 }

</bundles_post_ra>
